<compile_context>
chip_gen: v6e
topology: v6e:2x2x1
jax: 0.10.0
libtpu: 0.0.40
codegen_flags: <defaults>
</compile_context>

<pallas_src>
import functools

import jax
import jax.numpy as jnp
from jax.experimental import pallas as pl
from jax.experimental.pallas import tpu as pltpu


def _round_up(v, m):
    return -(-v // m) * m


def _tip_adapter_kernel(x_ref, keys_ref, values_ref, o_ref, acc_ref, *, beta):
    # Grid = (C_pad // tc, N_pad // tn):
    #   axis 0: "parallel" over class tiles (v7x two-TC / megacore sharding)
    #   axis 1: "arbitrary" reduction over the cache size N (innermost)
    #
    #   x_ref:      (B, D)    full query block, constant across the grid
    #   keys_ref:   (D, tn)   pre-transposed key block (natural MXU RHS layout)
    #   values_ref: (tn, tc)  value block
    #   o_ref:      (B, tc)   resident output tile for this class block
    #   acc_ref:    (B, tc)   float32 accumulator scratch
    k = pl.program_id(1)

    @pl.when(k == 0)
    def _():
        acc_ref[...] = jnp.zeros_like(acc_ref)

    # First matmul (MXU): (B, D) @ (D, tn) -> (B, tn) logits, f32 result.
    logits = jnp.dot(
        x_ref[...], keys_ref[...], preferred_element_type=jnp.float32
    )
    # exp(-beta * (1 - logits)) == exp(beta * logits - beta):
    # one VPU mul + sub, exp on the EUP (separate issue slot, essentially free).
    affinity = jnp.exp(beta * logits - beta)
    # Second matmul (MXU), accumulated over the cache axis; feed the MXU in the
    # cache dtype (bf16 by default) and keep the float32 accumulator.
    acc_ref[...] += jnp.dot(
        affinity.astype(values_ref.dtype),
        values_ref[...],
        preferred_element_type=jnp.float32,
    )

    @pl.when(k == pl.num_programs(1) - 1)
    def _():
        o_ref[...] = acc_ref[...].astype(o_ref.dtype)


def tip_adapter_forward(
    x,
    keys,
    values,
    beta,
    *,
    tn=None,
    tc=None,
    cache_dtype=jnp.bfloat16,
    vmem_budget_bytes=24 * 1024 * 1024,
):
    """Fused Tip-Adapter forward: exp(-beta * (1 - x @ keys.T)) @ values.

    x: (B, D); keys: (N, D); values: (N, C).  Returns (B, C) in x.dtype.

    The key/value cache is static in Tip-Adapter, so the transpose / cast /
    padding below is a one-time cost in practice (hoist it out of the per-call
    path when calling repeatedly).
    """
    B, D = x.shape
    N, D2 = keys.shape
    N2, C = values.shape
    assert D == D2 and N == N2

    out_dtype = x.dtype
    cache_bytes = jnp.dtype(cache_dtype).itemsize
    out_bytes = jnp.dtype(out_dtype).itemsize

    # ---- Tile selection (lane-dense C, large tn, VMEM-budgeted) ----
    c128 = _round_up(C, 128)
    if tc is None:
        tc = 256 if (c128 % 256 == 0) else 128
    assert tc % 128 == 0
    C_pad = _round_up(C, tc)

    if tn is None:
        tn = min(1024, _round_up(N, 256))

        # Re-derive the VMEM budget (matters most on v7x: 64 MiB physical,
        # 32 MiB default scoped limit): shrink tn until the double-buffered
        # tiles fit comfortably.
        def _vmem_need(t):
            return (
                2 * D * t * cache_bytes       # keys block (double-buffered)
                + 2 * t * tc * cache_bytes    # values block (double-buffered)
                + 2 * B * D * cache_bytes     # x block
                + B * tc * 4                  # f32 accumulator scratch
                + 2 * B * tc * out_bytes      # output tile
            )

        while tn > 256 and _vmem_need(tn) > vmem_budget_bytes:
            tn //= 2
    assert tn % 128 == 0
    N_pad = _round_up(N, tn)

    # ---- One-time cache prep: pad, transpose keys, cast to cache dtype ----
    # Padding N with zero VALUE rows is safe: those rows contribute exactly 0
    # regardless of the (don't-care) padded key rows.
    if C_pad != C:
        values = jnp.pad(values, ((0, 0), (0, C_pad - C)))
    if N_pad != N:
        values = jnp.pad(values, ((0, N_pad - N), (0, 0)))
        keys = jnp.pad(keys, ((0, N_pad - N), (0, 0)))
    keys_t = jnp.transpose(keys).astype(cache_dtype)   # (D, N_pad)
    values_p = values.astype(cache_dtype)              # (N_pad, C_pad)
    x_in = x.astype(cache_dtype)                       # queries in MXU dtype

    kernel = functools.partial(_tip_adapter_kernel, beta=float(beta))

    cost = pl.CostEstimate(
        flops=2 * B * N_pad * (D + C_pad),
        transcendentals=B * N_pad,
        bytes_accessed=(
            keys_t.size * cache_bytes
            + values_p.size * cache_bytes
            + x_in.size * cache_bytes
            + B * C_pad * out_bytes
        ),
    )

    out_padded = pl.pallas_call(
        kernel,
        out_shape=jax.ShapeDtypeStruct((B, C_pad), out_dtype),
        grid_spec=pltpu.PrefetchScalarGridSpec(
            num_scalar_prefetch=0,
            grid=(C_pad // tc, N_pad // tn),
            in_specs=[
                pl.BlockSpec((B, D), lambda c, k: (0, 0)),    # x: full, reused
                pl.BlockSpec((D, tn), lambda c, k: (0, k)),   # keys.T block
                pl.BlockSpec((tn, tc), lambda c, k: (k, c)),  # values block
            ],
            out_specs=pl.BlockSpec((B, tc), lambda c, k: (0, c)),
            scratch_shapes=[pltpu.VMEM((B, tc), jnp.float32)],
        ),
        compiler_params=pltpu.CompilerParams(
            # class axis parallel (v7x 2 TCs / megacore), cache axis = reduction
            dimension_semantics=("parallel", "arbitrary"),
            vmem_limit_bytes=32 * 1024 * 1024,
        ),
        cost_estimate=cost,
    )(x_in, keys_t, values_p)

    return out_padded[:, :C]


def tip_adapter_reference(x, keys, values, beta):
    logits = x @ keys.T
    affinity = jnp.exp(-beta * (1.0 - logits))
    return affinity @ values


if __name__ == "__main__":
    # Small, module-consistent shapes:
    #   B = batch of query features, D = feature dim,
    #   N = cache size (few-shot keys), C = number of classes.
    B, D, N, C = 8, 32, 256, 16
    beta = 5.5

    key = jax.random.PRNGKey(0)
    kx, kk = jax.random.split(key, 2)
    x = jax.random.normal(kx, (B, D), dtype=jnp.float32)
    # Normalize like CLIP-style features so exp() stays in a sane range.
    x = x / jnp.linalg.norm(x, axis=-1, keepdims=True)
    keys = jax.random.normal(kk, (N, D), dtype=jnp.float32)
    keys = keys / jnp.linalg.norm(keys, axis=-1, keepdims=True)
    # values is typically a one-hot label cache -> deterministic one-hot.
    labels = jnp.arange(N) % C
    values = jax.nn.one_hot(labels, C, dtype=jnp.float32)

    ref = tip_adapter_reference(x, keys, values, beta)

    # Full-precision cache path: validates the kernel structure tightly.
    out_f32 = jax.block_until_ready(
        tip_adapter_forward(x, keys, values, beta, cache_dtype=jnp.float32)
    )
    assert out_f32.shape == (B, C), out_f32.shape
    assert jnp.allclose(out_f32, ref, rtol=1e-4, atol=1e-4), (
        float(jnp.max(jnp.abs(out_f32 - ref)))
    )

    # Default bf16-cache path (HBM-optimized): looser tolerance.
    out_bf16 = jax.block_until_ready(tip_adapter_forward(x, keys, values, beta))
    assert out_bf16.shape == (B, C), out_bf16.shape
    assert jnp.allclose(out_bf16, ref, rtol=5e-2, atol=2e-2), (
        float(jnp.max(jnp.abs(out_bf16 - ref)))
    )

    print("KERNEL_OK")
</pallas_src>

<mosaic_0001>
module attributes {stable_mosaic.version = 11 : i64} {
  func.func @_tip_adapter_kernel(%arg0: i32, %arg1: i32, %arg2: memref<8x32xf32, #tpu.memory_space<vmem>>, %arg3: memref<32x256xf32, #tpu.memory_space<vmem>>, %arg4: memref<256x128xf32, #tpu.memory_space<vmem>>, %arg5: memref<8x128xf32, #tpu.memory_space<vmem>>, %arg6: memref<8x128xf32, #tpu.memory_space<vmem>>) attributes {dimension_semantics = [#tpu.dimension_semantics<parallel>, #tpu.dimension_semantics<arbitrary>], iteration_bounds = array<i64: 1, 1>, scalar_prefetch = 0 : i64, scratch_operands = 1 : i64, tpu.core_type = #tpu.core_type<tc>, window_params = [{pipeline_mode = #tpu.pipeline_mode<synchronous>, transform_indices = @transform_0, window_bounds = array<i64: 8, 32>}, {transform_indices = @transform_1, window_bounds = array<i64: 32, 256>}, {transform_indices = @transform_2, window_bounds = array<i64: 256, 128>}, {transform_indices = @transform_3, window_bounds = array<i64: 8, 128>}]} {
    %c0_i32 = arith.constant 0 : i32
    %0 = arith.cmpi eq, %arg1, %c0_i32 : i32
    %1 = arith.extui %0 : i1 to i32
    %c0_i32_0 = arith.constant 0 : i32
    %2 = arith.cmpi ne, %1, %c0_i32_0 : i32
    scf.if %2 {
      %cst_15 = arith.constant 0.000000e+00 : f32
      %19 = vector.broadcast %cst_15 : f32 to vector<8x128xf32>
      %c0_16 = arith.constant 0 : index
      %c0_17 = arith.constant 0 : index
      %20 = vector.load %arg6[%c0_16, %c0_17] : memref<8x128xf32, #tpu.memory_space<vmem>>, vector<8x128xf32>
      tpu.vector_store %arg6[%c0_16, %c0_17], %19 {strides = array<i32>} : memref<8x128xf32, #tpu.memory_space<vmem>>, vector<8x128xf32>,
    } else {
    }
    %c0 = arith.constant 0 : index
    %c0_1 = arith.constant 0 : index
    %3 = vector.load %arg2[%c0, %c0_1] : memref<8x32xf32, #tpu.memory_space<vmem>>, vector<8x32xf32>
    %c0_2 = arith.constant 0 : index
    %c0_3 = arith.constant 0 : index
    %4 = vector.load %arg3[%c0_2, %c0_3] : memref<32x256xf32, #tpu.memory_space<vmem>>, vector<32x256xf32>
    %cst = arith.constant dense<0.000000e+00> : vector<8x256xf32>
    %5 = tpu.matmul %3, %4, %cst {dimension_numbers = #tpu.dot_dimension_numbers<[1], [0], [0], [1], [0, 0, 1, 1], [], []>} : vector<8x32xf32>, vector<32x256xf32>, vector<8x256xf32> -> vector<8x256xf32>
    %cst_4 = arith.constant 5.500000e+00 : f32
    %6 = vector.broadcast %cst_4 : f32 to vector<8x256xf32>
    %7 = arith.mulf %6, %5 : vector<8x256xf32>
    %cst_5 = arith.constant 5.500000e+00 : f32
    %8 = vector.broadcast %cst_5 : f32 to vector<8x256xf32>
    %9 = arith.subf %7, %8 : vector<8x256xf32>
    %10 = math.exp %9 : vector<8x256xf32>
    %c0_6 = arith.constant 0 : index
    %c0_7 = arith.constant 0 : index
    %11 = vector.load %arg6[%c0_6, %c0_7] : memref<8x128xf32, #tpu.memory_space<vmem>>, vector<8x128xf32>
    %c0_8 = arith.constant 0 : index
    %c0_9 = arith.constant 0 : index
    %12 = vector.load %arg4[%c0_8, %c0_9] : memref<256x128xf32, #tpu.memory_space<vmem>>, vector<256x128xf32>
    %cst_10 = arith.constant dense<0.000000e+00> : vector<8x128xf32>
    %13 = tpu.matmul %10, %12, %cst_10 {dimension_numbers = #tpu.dot_dimension_numbers<[1], [0], [0], [1], [0, 0, 1, 1], [], []>} : vector<8x256xf32>, vector<256x128xf32>, vector<8x128xf32> -> vector<8x128xf32>
    %14 = arith.addf %11, %13 : vector<8x128xf32>
    %c0_11 = arith.constant 0 : index
    %c0_12 = arith.constant 0 : index
    %15 = vector.load %arg6[%c0_11, %c0_12] : memref<8x128xf32, #tpu.memory_space<vmem>>, vector<8x128xf32>
    tpu.vector_store %arg6[%c0_11, %c0_12], %14 {strides = array<i32>} : memref<8x128xf32, #tpu.memory_space<vmem>>, vector<8x128xf32>,
    %c0_i32_13 = arith.constant 0 : i32
    %16 = arith.cmpi eq, %arg1, %c0_i32_13 : i32
    %17 = arith.extui %16 : i1 to i32
    %c0_i32_14 = arith.constant 0 : i32
    %18 = arith.cmpi ne, %17, %c0_i32_14 : i32
    scf.if %18 {
      %c0_15 = arith.constant 0 : index
      %c0_16 = arith.constant 0 : index
      %19 = vector.load %arg6[%c0_15, %c0_16] : memref<8x128xf32, #tpu.memory_space<vmem>>, vector<8x128xf32>
      %c0_17 = arith.constant 0 : index
      %c0_18 = arith.constant 0 : index
      %20 = vector.load %arg5[%c0_17, %c0_18] : memref<8x128xf32, #tpu.memory_space<vmem>>, vector<8x128xf32>
      tpu.vector_store %arg5[%c0_17, %c0_18], %19 {strides = array<i32>} : memref<8x128xf32, #tpu.memory_space<vmem>>, vector<8x128xf32>,
    } else {
    }
    return
  }
  func.func @transform_0(%arg0: i32, %arg1: i32) -> (i32, i32) {
    %c0_i32 = arith.constant 0 : i32
    %c0_i32_0 = arith.constant 0 : i32
    %c0_i32_1 = arith.constant 0 : i32
    return %c0_i32, %c0_i32_0 : i32, i32
  }
  func.func @transform_1(%arg0: i32, %arg1: i32) -> (i32, i32) {
    %c0_i32 = arith.constant 0 : i32
    %c0_i32_0 = arith.constant 0 : i32
    return %c0_i32, %arg1 : i32, i32
  }
  func.func @transform_2(%arg0: i32, %arg1: i32) -> (i32, i32) {
    %c0_i32 = arith.constant 0 : i32
    return %arg1, %arg0 : i32, i32
  }
  func.func @transform_3(%arg0: i32, %arg1: i32) -> (i32, i32) {
    %c0_i32 = arith.constant 0 : i32
    %c0_i32_0 = arith.constant 0 : i32
    return %c0_i32, %arg0 : i32, i32
  }
}

</mosaic_0001>

<bundles_post_ra>
// kernel: tpu_custom_call.1
= control target key start
LH: loop header
LB: loop body
LE: loop exit
PB: predicated region body
PF: predicated region fallthrough
CT: control target
= control target key end

     0   :  { %8 = vsyncpa [#allocation4], 0  ;;  %s455_s0 = inlined_call_operand.hbm [shape: f32[8,32], index: 0, kind: input, shape index: {}]   ;;  %s456_s1 = inlined_call_operand.hbm [shape: f32[32,256], index: 1, kind: input, shape index: {}]   ;;  %s457_s2 = inlined_call_operand.hbm [shape: f32[256,128], index: 2, kind: input, shape index: {}]   ;;  %s458_s3 = inlined_call_operand.hbm [shape: f32[8,128], index: 3, kind: output, shape index: {}]  }
   0x1   :  { %9 = vsyncpa [#allocation7], 0 }
   0x2   :  { %10 = vsyncpa [#allocation5], 0  ;;  %s414_s12 = smov [#allocation6]  }
   0x3   :  { %s26_s13 = sshll.u32 %s414_s12, 4  ;;  %s27_s13 = int_to_ptr.vmem [resolvable:$true] %s26_s13 }
   0x4   :  { %s336_s14 = scalar_lea.vmem %s27_s13, 1024  ;;  %p341_p1 = scmp.lt.s32.totalorder %s27_s13, %s27_s13 }
   0x5   :  { %p337_p0 = scmp.ne.s32.totalorder %s27_s13, %s336_s14  ;;  %p342_p2 = scmp.lt.s32.totalorder %s336_s14, %s336_s14 }
   0x7   :  { %p343_p3 = por %p342_p2, %p341_p1 }
   0x9   :  { %p344_p4 = pnand %p343_p3, %p337_p0 }
   0xb   :  { %347 = shalt.err (!%p344_p4)
}
   0xc   :  { %s415_s15 = smov 256   ;;  %s416_s16 = smov 16  }
   0xd   :  { %32 = dma.hbm_to_vmem [thread:$0]  %s456_s1, 1024, %s27_s13, [#allocation7], %s415_s15, %s415_s15, %s416_s16  }
   0xe   :  { %s417_s19 = smov [#allocation3]   ;;  %s418_s21 = smov [#allocation8]  }
   0xf   :  { %s17_s20 = sshll.u32 %s417_s19, 4  ;;  %s38_s22 = sshll.u32 %s418_s21, 4  ;;  %s18_s20 = int_to_ptr.vmem [resolvable:$true] %s17_s20  ;;  %s39_s22 = int_to_ptr.vmem [resolvable:$true] %s38_s22 }
  0x10   :  { %s356_s23 = scalar_lea.vmem %s18_s20, 128  ;;  %p361_p6 = scmp.lt.s32.totalorder %s18_s20, %s18_s20 }
  0x11   :  { %p357_p5 = scmp.ne.s32.totalorder %s18_s20, %s356_s23  ;;  %p362_p7 = scmp.lt.s32.totalorder %s356_s23, %s356_s23 }
  0x13   :  { %p363_p8 = por %p362_p7, %p361_p6 }
  0x15   :  { %p364_p9 = pnand %p363_p8, %p357_p5 }
  0x17   :  { %367 = shalt.err (!%p364_p9)
}
  0x18   :  { %20 = dma.hbm_to_vmem [thread:$0]  %s455_s0, 128, %s18_s20, [#allocation4]  }
  0x19   :  { %s376_s26 = scalar_lea.vmem %s39_s22, 4096  ;;  %p381_p11 = scmp.lt.s32.totalorder %s39_s22, %s39_s22 }
  0x1a   :  { %p377_p10 = scmp.ne.s32.totalorder %s39_s22, %s376_s26  ;;  %p382_p12 = scmp.lt.s32.totalorder %s376_s26, %s376_s26 }
  0x1c   :  { %p383_p13 = por %p382_p12, %p381_p11 }
  0x1e   :  { %p384_p0 = pnand %p383_p13, %p377_p10 }
  0x20   :  { %387 = shalt.err (!%p384_p0)
}
  0x21   :  { %s419_s1 = smov 128   ;;  %s420_s27 = smov 8  }
  0x22   :  { %44 = dma.hbm_to_vmem [thread:$0]  %s457_s2, 4096, %s39_s22, [#allocation7], %s419_s1, %s419_s1, %s420_s27  }
  0x23   :  { %408 = dma.done.wait [#allocation4], 128  }
  0x24   :  { %409 = vsyncadd [#allocation4], 4294967168 }
  0x25   :  { %410 = dma.done.wait [#allocation7], 5120  }
  0x26   :  { %411 = vsyncadd [#allocation7], 4294962176  ;;  %v421_v0 = vmov 0.0   ;;  %v67_v1 = vld [vmem:[#allocation6 + $0x38] sm:$0xff]  ;;  %v66_v2 = vld [vmem:[#allocation6 + $0x30] sm:$0xff]  ;;  %vm68_vm0 = vcmask 261120  }
  0x27   :  { %136 = vmatprep.mubr.f32.mxu0 %v421_v0  ;;  %v65_v3 = vld [vmem:[#allocation6 + $0x28] sm:$0xff]  ;;  %96 = vmatprep.subr.mxu0 %v67_v1  ;;  %v64_v4 = vld [vmem:[#allocation6 + $0x20] sm:$0xff]  ;;  %v63_v5 = vld [vmem:[#allocation6 + $0x18] sm:$0xff]  ;;  %s422_s0 = smov [#allocation9]  }
  0x28   :  { %97 = vmatpush1.msra.mxu0 %v66_v2  ;;  %v62_v6 = vld [vmem:[#allocation6 + $0x10] sm:$0xff]  ;;  %v183_v7 = vld [vmem:[#allocation8 + $0xf8] sm:$0xff]  ;;  %v61_v10 = vld [vmem:[#allocation6 + $0x8] sm:$0xff]  ;;  %s267_s2 = sshll.u32 %s422_s0, 4  ;;  %s268_s2 = int_to_ptr.vmem [resolvable:$true] %s267_s2 }
  0x29   :  { %98 = vmatprep.subr.mxu0 %v65_v3  ;;  %v167_v8 = vld [vmem:[#allocation8 + $0x78] sm:$0xff]  ;;  %v182_v9 = vld [vmem:[#allocation8 + $0xf0] sm:$0xff]  ;;  %280 = vmatprep.subr.mxu1 %v183_v7  ;;  %v60_v12 = vld [vmem:[#allocation6] sm:$0xff]  ;;  %s388_s30 = scalar_lea.vmem %s268_s2, 128  ;;  %p393_p2 = scmp.lt.s32.totalorder %s268_s2, %s268_s2 }
  0x2a   :  { %99 = vmatpush1.msra.mxu0 %v64_v4  ;;  %v166_v11 = vld [vmem:[#allocation8 + $0x70] sm:$0xff]  ;;  %281 = vmatpush3.msra.mxu1 %v167_v8  ;;  %v181_v13 = vld [vmem:[#allocation8 + $0xe8] sm:$0xff]  ;;  %v59_v14 = vld [vmem:[#allocation3] sm:$0xff]  ;;  %p389_p1 = scmp.ne.s32.totalorder %s268_s2, %s388_s30  ;;  %p394_p3 = scmp.lt.s32.totalorder %s388_s30, %s388_s30 }
  0x2b   :  { %100 = vmatprep.subr.mxu0 %v63_v5  ;;  %282 = vmatprep.subr.mxu1 %v182_v9  ;;  %v165_v15 = vld [vmem:[#allocation8 + $0x68] sm:$0xff]  ;;  %v180_v16 = vld [vmem:[#allocation8 + $0xe0] sm:$0xff]  ;;  %v179_v18 = vld [vmem:[#allocation8 + $0xd8] sm:$0xff] }
  0x2c   :  { %101 = vmatpush1.msra.mxu0 %v62_v6  ;;  %283 = vmatpush3.msra.mxu1 %v166_v11  ;;  %v164_v17 = vld [vmem:[#allocation8 + $0x60] sm:$0xff]  ;;  %v163_v19 = vld [vmem:[#allocation8 + $0x58] sm:$0xff]  ;;  %v178_v20 = vld [vmem:[#allocation8 + $0xd0] sm:$0xff]  ;;  %p395_p4 = por %p394_p3, %p393_p2 }
  0x2d   :  { %102 = vmatprep.subr.mxu0 %v61_v10  ;;  %284 = vmatprep.subr.mxu1 %v181_v13  ;;  %v162_v21 = vld [vmem:[#allocation8 + $0x50] sm:$0xff]  ;;  %v177_v22 = vld [vmem:[#allocation8 + $0xc8] sm:$0xff]  ;;  %v176_v24 = vld [vmem:[#allocation8 + $0xc0] sm:$0xff] }
  0x2e   :  { %103 = vmatpush1.msra.mxu0 %v60_v12  ;;  %285 = vmatpush3.msra.mxu1 %v165_v15  ;;  %v161_v23 = vld [vmem:[#allocation8 + $0x48] sm:$0xff]  ;;  %v160_v25 = vld [vmem:[#allocation8 + $0x40] sm:$0xff]  ;;  %v175_v26 = vld [vmem:[#allocation8 + $0xb8] sm:$0xff]  ;;  %p396_p5 = pnand %p395_p4, %p389_p1 }
  0x2f   :  { %277 = vmatmul.mubr.msk.f32.vlgmr.msra.gmra.mxu0 %vm68_vm0, %v59_v14  ;;  %286 = vmatprep.subr.mxu1 %v180_v16  ;;  %v159_v27 = vld [vmem:[#allocation8 + $0x38] sm:$0xff]  ;;  %v174_v28 = vld [vmem:[#allocation8 + $0xb0] sm:$0xff]  ;;  %v173_v30 = vld [vmem:[#allocation8 + $0xa8] sm:$0xff] }
  0x30   :  { %287 = vmatpush3.msra.mxu1 %v164_v17  ;;  %v158_v29 = vld [vmem:[#allocation8 + $0x30] sm:$0xff]  ;;  %v157_v31 = vld [vmem:[#allocation8 + $0x28] sm:$0xff]  ;;  %v172_v32 = vld [vmem:[#allocation8 + $0xa0] sm:$0xff] }
  0x31   :  { %288 = vmatprep.subr.mxu1 %v179_v18  ;;  %v156_v33 = vld [vmem:[#allocation8 + $0x20] sm:$0xff]  ;;  %v171_v34 = vld [vmem:[#allocation8 + $0x98] sm:$0xff]  ;;  %v170_v36 = vld [vmem:[#allocation8 + $0x90] sm:$0xff] }
  0x32   :  { %289 = vmatpush3.msra.mxu1 %v163_v19  ;;  %v155_v35 = vld [vmem:[#allocation8 + $0x18] sm:$0xff]  ;;  %v154_v37 = vld [vmem:[#allocation8 + $0x10] sm:$0xff]  ;;  %v169_v38 = vld [vmem:[#allocation8 + $0x88] sm:$0xff] }
  0x33   :  { %290 = vmatprep.subr.mxu1 %v178_v20  ;;  %v153_v39 = vld [vmem:[#allocation8 + $0x8] sm:$0xff]  ;;  %v168_v40 = vld [vmem:[#allocation8 + $0x80] sm:$0xff] }
  0x34   :  { %291 = vmatpush3.msra.mxu1 %v162_v21  ;;  %v152_v41 = vld [vmem:[#allocation8] sm:$0xff] }
  0x35   :  { %292 = vmatprep.subr.mxu1 %v177_v22 }
  0x36   :  { %293 = vmatpush3.msra.mxu1 %v161_v23 }
  0x37   :  { %294 = vmatprep.subr.mxu1 %v176_v24 }
  0x38   :  { %295 = vmatpush3.msra.mxu1 %v160_v25 }
  0x39   :  { %296 = vmatprep.subr.mxu1 %v175_v26 }
  0x3a   :  { %297 = vmatpush3.msra.mxu1 %v159_v27 }
  0x3b   :  { %298 = vmatprep.subr.mxu1 %v174_v28 }
  0x3c   :  { %299 = vmatpush3.msra.mxu1 %v158_v29 }
  0x3d   :  { %300 = vmatprep.subr.mxu1 %v173_v30 }
  0x3e   :  { %301 = vmatpush3.msra.mxu1 %v157_v31 }
  0x3f   :  { %302 = vmatprep.subr.mxu1 %v172_v32 }
  0x40   :  { %303 = vmatpush3.msra.mxu1 %v156_v33 }
  0x41   :  { %304 = vmatprep.subr.mxu1 %v171_v34 }
  0x42   :  { %305 = vmatpush3.msra.mxu1 %v155_v35 }
  0x43   :  { %306 = vmatprep.subr.mxu1 %v170_v36 }
  0x44   :  { %307 = vmatpush3.msra.mxu1 %v154_v37 }
  0x45   :  { %308 = vmatprep.subr.mxu1 %v169_v38 }
  0x46   :  { %309 = vmatpush3.msra.mxu1 %v153_v39 }
  0x47   :  { %310 = vmatprep.subr.mxu1 %v168_v40 }
  0x48   :  { %311 = vmatpush3.msra.mxu1 %v152_v41 }
  0xef   :  { %v138_v42 = vpop.f32.mrf.mxu0 }
  0xf0   :  { %v143_v43 = vmul.f32 5.5, %v138_v42 }
  0xf1   :  { %v140_v44 = vpop.f32.mrf.mxu0 }
  0xf2   :  { %v278_v45 = vadd.f32 -5.5, %v143_v43  ;;  %v144_v46 = vmul.f32 5.5, %v140_v44 }
  0xf4   :  { %v279_v47 = vadd.f32 -5.5, %v144_v46  ;;  %v147_v48 = vmul.f32 1.442695, %v278_v45 }
  0xf6   :  { %v149_v49 = vmul.f32 1.442695, %v279_v47 }
  0xf8   :  { %324 = vpow2.f32 %v149_v49 }
  0xf9   :  { %326 = vpow2.f32 %v147_v48 }
 0x105   :  { %v325_v50 = vpop.eup %324 }
 0x106   :  { %v327_v51 = vpop.eup %326  ;;  %248 = vmatprep.mubr.f32.mxu1 %v325_v50 }
 0x107   :  { %249 = vmatmul.mubr.f32.vlgmr.msra.gmra.mxu1 %v327_v51 }
 0x1c7   :  { %v312_v52 = vpop.f32.mrf.mxu1 }
 0x1c9   :  { %v313_v53 = vpop.f32.mrf.mxu1 }
 0x1ca   :  { %v314_v54 = vadd.f32 %v313_v53, %v312_v52 }
 0x1cc   :  { %260 = vst [vmem:[#allocation9] sm:$0xff] %v314_v54 }
 0x1cd   :  { %399 = shalt.err (!%p396_p5)
}
 0x1ce   :  { %270 = dma.vmem_to_hbm [thread:$0]  %s268_s2, 128, %s458_s3, [#allocation5]  }
 0x1cf   :  { %412 = dma.done.wait [#allocation5], 128  }
 0x1d0   :  { %413 = vsyncadd [#allocation5], 4294967168 }
 0x1d1   :  { %274 = vsyncpa [#allocation4], 1 }
 0x1d2   :  { %275 = vsyncpa [#allocation7], 1 }
 0x1d3   :  { %276 = vsyncpa [#allocation5], 1 }

</bundles_post_ra>
